<compile_context>
chip_gen: v6e
topology: v6e:2x2x1
jax: 0.10.0
libtpu: 0.0.40
codegen_flags: <defaults>
</compile_context>

<pallas_src>
import jax
import jax.numpy as jnp
from jax.experimental import pallas as pl
from jax.experimental.pallas import tpu as pltpu

# SELU constants (match torch.nn.SELU)
_SELU_ALPHA = 1.6732632423543772848170429916717
_SELU_SCALE = 1.0507009873554804934193349852946


def _selu(y):
    # f32 math; exp runs in the EUP slot (effectively free next to the matmuls).
    # (exp(y)-1 instead of expm1 for Mosaic lowering safety; the extra vsub is negligible.)
    return _SELU_SCALE * jnp.where(y > 0, y, _SELU_ALPHA * (jnp.exp(y) - 1.0))


def mlp_selu_kernel(x_ref, w0_ref, b0_ref, wr_ref, br_ref, o_ref):
    # x_ref : (P, TB)      bf16   batch tile (batch on lanes)
    # w0_ref: (H, P)       bf16   resident
    # b0_ref: (H, 1)       f32    resident
    # wr_ref: (L-1, H, H)  bf16   resident
    # br_ref: (L-1, H, 1)  f32    resident
    # o_ref : (H, TB)      f32
    h = _selu(
        jnp.dot(w0_ref[...], x_ref[...], preferred_element_type=jnp.float32)
        + b0_ref[...]
    )
    # Remaining layers: static unroll (trip count is tiny and known at trace time).
    for i in range(wr_ref.shape[0]):
        h = _selu(
            jnp.dot(wr_ref[i], h.astype(jnp.bfloat16),
                    preferred_element_type=jnp.float32)
            + br_ref[i]
        )
    o_ref[...] = h


def _round_up(n, m):
    return ((n + m - 1) // m) * m


def properties_encoder_sn(x, w0, b0, w_rest, b_rest, *, tb=512):
    """x: (B, P) f32. w0: (H, P), w_rest: (L-1, H, H) in PyTorch (out, in) layout.
    b0: (H,)/(H,1), b_rest: (L-1, H)/(L-1, H, 1). Returns (B, H) f32."""
    B, P = x.shape
    H = w0.shape[0]
    L1 = w_rest.shape[0]

    b0 = b0.reshape(H, 1).astype(jnp.float32)
    b_rest = b_rest.reshape(L1, H, 1).astype(jnp.float32)

    # Batch on lanes; pad batch up to a multiple of the (128-aligned) batch tile.
    tb = max(128, min(_round_up(tb, 128), _round_up(B, 128)))
    b_pad = _round_up(B, tb)
    x_t = x.T.astype(jnp.bfloat16)                       # (P, B) lane-dense layout
    if b_pad != B:
        x_t = jnp.pad(x_t, ((0, 0), (0, b_pad - B)))     # zero cols -> finite outputs, sliced off

    grid = (b_pad // tb,)
    out_t = pl.pallas_call(
        mlp_selu_kernel,
        out_shape=jax.ShapeDtypeStruct((H, b_pad), jnp.float32),
        grid_spec=pltpu.PrefetchScalarGridSpec(
            num_scalar_prefetch=0,
            grid=grid,
            in_specs=[
                pl.BlockSpec((P, tb), lambda i: (0, i)),        # streamed batch tile
                pl.BlockSpec((H, P), lambda i: (0, 0)),         # resident weights/biases
                pl.BlockSpec((H, 1), lambda i: (0, 0)),
                pl.BlockSpec((L1, H, H), lambda i: (0, 0, 0)),
                pl.BlockSpec((L1, H, 1), lambda i: (0, 0, 0)),
            ],
            out_specs=pl.BlockSpec((H, tb), lambda i: (0, i)),
        ),
        compiler_params=pltpu.CompilerParams(
            dimension_semantics=("parallel",),   # shard batch tiles across TCs on v7x
        ),
    )(x_t, w0.astype(jnp.bfloat16), b0, w_rest.astype(jnp.bfloat16), b_rest)

    return out_t[:, :B].T                                 # back to (B, H)


def init_params(key, num_layers, properties_length, hidden_dim):
    """Mirror the PyTorch module: weight ~ N(0, sqrt(1/in_features)) (explicit in __init__);
    bias left at the torch.nn.Linear default U(-1/sqrt(in), 1/sqrt(in)).
    Weights are produced in PyTorch-native (out, in) layout."""
    keys = jax.random.split(key, 2 * num_layers)
    in_features = properties_length
    w0 = b0 = None
    w_rest, b_rest = [], []
    for i in range(num_layers):
        std = (1.0 / in_features) ** 0.5
        w = std * jax.random.normal(keys[2 * i], (hidden_dim, in_features), dtype=jnp.float32)
        bound = 1.0 / (in_features ** 0.5)
        b = jax.random.uniform(keys[2 * i + 1], (hidden_dim, 1), dtype=jnp.float32,
                               minval=-bound, maxval=bound)
        if i == 0:
            w0, b0 = w, b
        else:
            w_rest.append(w)
            b_rest.append(b)
        in_features = hidden_dim
    return w0, b0, jnp.stack(w_rest, axis=0), jnp.stack(b_rest, axis=0)


def reference_forward(x, w0, b0, w_rest, b_rest):
    """Pure-JAX reference replicating the kernel numerics (bf16 matmul operands, f32 acc)."""
    f32, bf16 = jnp.float32, jnp.bfloat16

    def bdot(w, a):
        return jnp.dot(w.astype(bf16).astype(f32), a.astype(bf16).astype(f32),
                       preferred_element_type=f32)

    h = _selu(bdot(w0, x.T) + b0.reshape(-1, 1))
    for i in range(w_rest.shape[0]):
        h = _selu(bdot(w_rest[i], h) + b_rest[i].reshape(-1, 1))
    return h.T


if __name__ == "__main__":
    # Small shapes consistent with the module's forward: x is (batch, properties_length).
    # batch=600 is a non-multiple of the 512 batch tile -> exercises padding + a 2-step grid.
    num_layers = 4
    properties_length = 10
    hidden_dim = 32
    batch = 600

    key = jax.random.PRNGKey(0)
    kx, kp = jax.random.split(key)
    x = jax.random.normal(kx, (batch, properties_length), dtype=jnp.float32)
    w0, b0, w_rest, b_rest = init_params(kp, num_layers, properties_length, hidden_dim)

    out = properties_encoder_sn(x, w0, b0, w_rest, b_rest)
    out = jax.block_until_ready(out)

    ref = reference_forward(x, w0, b0, w_rest, b_rest)
    assert out.shape == (batch, hidden_dim)
    assert bool(jnp.allclose(out, ref, atol=1e-3, rtol=1e-3)), \
        float(jnp.max(jnp.abs(out - ref)))

    print("KERNEL_OK")
</pallas_src>

<mosaic_0001>
module attributes {stable_mosaic.version = 11 : i64} {
  func.func @mlp_selu_kernel(%arg0: i32, %arg1: memref<10x512xbf16, #tpu.memory_space<vmem>>, %arg2: memref<32x10xbf16, #tpu.memory_space<vmem>>, %arg3: memref<32x1xf32, #tpu.memory_space<vmem>>, %arg4: memref<3x32x32xbf16, #tpu.memory_space<vmem>>, %arg5: memref<3x32x1xf32, #tpu.memory_space<vmem>>, %arg6: memref<32x512xf32, #tpu.memory_space<vmem>>) attributes {dimension_semantics = [#tpu.dimension_semantics<parallel>], iteration_bounds = array<i64: 2>, scalar_prefetch = 0 : i64, scratch_operands = 0 : i64, tpu.core_type = #tpu.core_type<tc>, window_params = [{transform_indices = @transform_0, window_bounds = array<i64: 10, 512>}, {pipeline_mode = #tpu.pipeline_mode<synchronous>, transform_indices = @transform_1, window_bounds = array<i64: 32, 10>}, {pipeline_mode = #tpu.pipeline_mode<synchronous>, transform_indices = @transform_2, window_bounds = array<i64: 32, 1>}, {pipeline_mode = #tpu.pipeline_mode<synchronous>, transform_indices = @transform_3, window_bounds = array<i64: 3, 32, 32>}, {pipeline_mode = #tpu.pipeline_mode<synchronous>, transform_indices = @transform_4, window_bounds = array<i64: 3, 32, 1>}, {transform_indices = @transform_5, window_bounds = array<i64: 32, 512>}]} {
    %c0 = arith.constant 0 : index
    %c0_0 = arith.constant 0 : index
    %0 = vector.load %arg2[%c0, %c0_0] : memref<32x10xbf16, #tpu.memory_space<vmem>>, vector<32x10xbf16>
    %c0_1 = arith.constant 0 : index
    %c0_2 = arith.constant 0 : index
    %1 = vector.load %arg1[%c0_1, %c0_2] : memref<10x512xbf16, #tpu.memory_space<vmem>>, vector<10x512xbf16>
    %cst = arith.constant dense<0.000000e+00> : vector<32x512xf32>
    %2 = tpu.matmul %0, %1, %cst {dimension_numbers = #tpu.dot_dimension_numbers<[1], [0], [0], [1], [0, 0, 1, 1], [], []>} : vector<32x10xbf16>, vector<10x512xbf16>, vector<32x512xf32> -> vector<32x512xf32>
    %c0_3 = arith.constant 0 : index
    %c0_4 = arith.constant 0 : index
    %3 = vector.load %arg3[%c0_3, %c0_4] : memref<32x1xf32, #tpu.memory_space<vmem>>, vector<32x1xf32>
    %4 = vector.broadcast %3 : vector<32x1xf32> to vector<32x512xf32>
    %5 = arith.addf %2, %4 : vector<32x512xf32>
    %cst_5 = arith.constant 0.000000e+00 : f32
    %6 = vector.broadcast %cst_5 : f32 to vector<32x512xf32>
    %7 = arith.cmpf ogt, %5, %6 : vector<32x512xf32>
    %8 = math.exp %5 : vector<32x512xf32>
    %cst_6 = arith.constant 1.000000e+00 : f32
    %9 = vector.broadcast %cst_6 : f32 to vector<32x512xf32>
    %10 = arith.subf %8, %9 : vector<32x512xf32>
    %cst_7 = arith.constant 1.67326319 : f32
    %11 = vector.broadcast %cst_7 : f32 to vector<32x512xf32>
    %12 = arith.mulf %11, %10 : vector<32x512xf32>
    %13 = arith.select %7, %5, %12 : vector<32x512xi1>, vector<32x512xf32>
    %cst_8 = arith.constant 1.05070102 : f32
    %14 = vector.broadcast %cst_8 : f32 to vector<32x512xf32>
    %15 = arith.mulf %14, %13 : vector<32x512xf32>
    %c0_9 = arith.constant 0 : index
    %c0_10 = arith.constant 0 : index
    %c0_11 = arith.constant 0 : index
    %16 = vector.load %arg4[%c0_9, %c0_10, %c0_11] : memref<3x32x32xbf16, #tpu.memory_space<vmem>>, vector<1x32x32xbf16>
    %17 = vector.shape_cast %16 : vector<1x32x32xbf16> to vector<32x32xbf16>
    %18 = arith.truncf %15 : vector<32x512xf32> to vector<32x512xbf16>
    %cst_12 = arith.constant dense<0.000000e+00> : vector<32x512xf32>
    %19 = tpu.matmul %17, %18, %cst_12 {dimension_numbers = #tpu.dot_dimension_numbers<[1], [0], [0], [1], [0, 0, 1, 1], [], []>} : vector<32x32xbf16>, vector<32x512xbf16>, vector<32x512xf32> -> vector<32x512xf32>
    %c0_13 = arith.constant 0 : index
    %c0_14 = arith.constant 0 : index
    %c0_15 = arith.constant 0 : index
    %20 = vector.load %arg5[%c0_13, %c0_14, %c0_15] : memref<3x32x1xf32, #tpu.memory_space<vmem>>, vector<1x32x1xf32>
    %21 = vector.shape_cast %20 : vector<1x32x1xf32> to vector<32x1xf32>
    %22 = vector.broadcast %21 : vector<32x1xf32> to vector<32x512xf32>
    %23 = arith.addf %19, %22 : vector<32x512xf32>
    %cst_16 = arith.constant 0.000000e+00 : f32
    %24 = vector.broadcast %cst_16 : f32 to vector<32x512xf32>
    %25 = arith.cmpf ogt, %23, %24 : vector<32x512xf32>
    %26 = math.exp %23 : vector<32x512xf32>
    %cst_17 = arith.constant 1.000000e+00 : f32
    %27 = vector.broadcast %cst_17 : f32 to vector<32x512xf32>
    %28 = arith.subf %26, %27 : vector<32x512xf32>
    %cst_18 = arith.constant 1.67326319 : f32
    %29 = vector.broadcast %cst_18 : f32 to vector<32x512xf32>
    %30 = arith.mulf %29, %28 : vector<32x512xf32>
    %31 = arith.select %25, %23, %30 : vector<32x512xi1>, vector<32x512xf32>
    %cst_19 = arith.constant 1.05070102 : f32
    %32 = vector.broadcast %cst_19 : f32 to vector<32x512xf32>
    %33 = arith.mulf %32, %31 : vector<32x512xf32>
    %c1 = arith.constant 1 : index
    %c0_20 = arith.constant 0 : index
    %c0_21 = arith.constant 0 : index
    %34 = vector.load %arg4[%c1, %c0_20, %c0_21] : memref<3x32x32xbf16, #tpu.memory_space<vmem>>, vector<1x32x32xbf16>
    %35 = vector.shape_cast %34 : vector<1x32x32xbf16> to vector<32x32xbf16>
    %36 = arith.truncf %33 : vector<32x512xf32> to vector<32x512xbf16>
    %cst_22 = arith.constant dense<0.000000e+00> : vector<32x512xf32>
    %37 = tpu.matmul %35, %36, %cst_22 {dimension_numbers = #tpu.dot_dimension_numbers<[1], [0], [0], [1], [0, 0, 1, 1], [], []>} : vector<32x32xbf16>, vector<32x512xbf16>, vector<32x512xf32> -> vector<32x512xf32>
    %c1_23 = arith.constant 1 : index
    %c0_24 = arith.constant 0 : index
    %c0_25 = arith.constant 0 : index
    %38 = vector.load %arg5[%c1_23, %c0_24, %c0_25] : memref<3x32x1xf32, #tpu.memory_space<vmem>>, vector<1x32x1xf32>
    %39 = vector.shape_cast %38 : vector<1x32x1xf32> to vector<32x1xf32>
    %40 = vector.broadcast %39 : vector<32x1xf32> to vector<32x512xf32>
    %41 = arith.addf %37, %40 : vector<32x512xf32>
    %cst_26 = arith.constant 0.000000e+00 : f32
    %42 = vector.broadcast %cst_26 : f32 to vector<32x512xf32>
    %43 = arith.cmpf ogt, %41, %42 : vector<32x512xf32>
    %44 = math.exp %41 : vector<32x512xf32>
    %cst_27 = arith.constant 1.000000e+00 : f32
    %45 = vector.broadcast %cst_27 : f32 to vector<32x512xf32>
    %46 = arith.subf %44, %45 : vector<32x512xf32>
    %cst_28 = arith.constant 1.67326319 : f32
    %47 = vector.broadcast %cst_28 : f32 to vector<32x512xf32>
    %48 = arith.mulf %47, %46 : vector<32x512xf32>
    %49 = arith.select %43, %41, %48 : vector<32x512xi1>, vector<32x512xf32>
    %cst_29 = arith.constant 1.05070102 : f32
    %50 = vector.broadcast %cst_29 : f32 to vector<32x512xf32>
    %51 = arith.mulf %50, %49 : vector<32x512xf32>
    %c2 = arith.constant 2 : index
    %c0_30 = arith.constant 0 : index
    %c0_31 = arith.constant 0 : index
    %52 = vector.load %arg4[%c2, %c0_30, %c0_31] : memref<3x32x32xbf16, #tpu.memory_space<vmem>>, vector<1x32x32xbf16>
    %53 = vector.shape_cast %52 : vector<1x32x32xbf16> to vector<32x32xbf16>
    %54 = arith.truncf %51 : vector<32x512xf32> to vector<32x512xbf16>
    %cst_32 = arith.constant dense<0.000000e+00> : vector<32x512xf32>
    %55 = tpu.matmul %53, %54, %cst_32 {dimension_numbers = #tpu.dot_dimension_numbers<[1], [0], [0], [1], [0, 0, 1, 1], [], []>} : vector<32x32xbf16>, vector<32x512xbf16>, vector<32x512xf32> -> vector<32x512xf32>
    %c2_33 = arith.constant 2 : index
    %c0_34 = arith.constant 0 : index
    %c0_35 = arith.constant 0 : index
    %56 = vector.load %arg5[%c2_33, %c0_34, %c0_35] : memref<3x32x1xf32, #tpu.memory_space<vmem>>, vector<1x32x1xf32>
    %57 = vector.shape_cast %56 : vector<1x32x1xf32> to vector<32x1xf32>
    %58 = vector.broadcast %57 : vector<32x1xf32> to vector<32x512xf32>
    %59 = arith.addf %55, %58 : vector<32x512xf32>
    %cst_36 = arith.constant 0.000000e+00 : f32
    %60 = vector.broadcast %cst_36 : f32 to vector<32x512xf32>
    %61 = arith.cmpf ogt, %59, %60 : vector<32x512xf32>
    %62 = math.exp %59 : vector<32x512xf32>
    %cst_37 = arith.constant 1.000000e+00 : f32
    %63 = vector.broadcast %cst_37 : f32 to vector<32x512xf32>
    %64 = arith.subf %62, %63 : vector<32x512xf32>
    %cst_38 = arith.constant 1.67326319 : f32
    %65 = vector.broadcast %cst_38 : f32 to vector<32x512xf32>
    %66 = arith.mulf %65, %64 : vector<32x512xf32>
    %67 = arith.select %61, %59, %66 : vector<32x512xi1>, vector<32x512xf32>
    %cst_39 = arith.constant 1.05070102 : f32
    %68 = vector.broadcast %cst_39 : f32 to vector<32x512xf32>
    %69 = arith.mulf %68, %67 : vector<32x512xf32>
    %c0_40 = arith.constant 0 : index
    %c0_41 = arith.constant 0 : index
    %70 = vector.load %arg6[%c0_40, %c0_41] : memref<32x512xf32, #tpu.memory_space<vmem>>, vector<32x512xf32>
    tpu.vector_store %arg6[%c0_40, %c0_41], %69 {strides = array<i32>} : memref<32x512xf32, #tpu.memory_space<vmem>>, vector<32x512xf32>,
    return
  }
  func.func @transform_0(%arg0: i32) -> (i32, i32) {
    %c0_i32 = arith.constant 0 : i32
    %c0_i32_0 = arith.constant 0 : i32
    return %c0_i32, %arg0 : i32, i32
  }
  func.func @transform_1(%arg0: i32) -> (i32, i32) {
    %c0_i32 = arith.constant 0 : i32
    %c0_i32_0 = arith.constant 0 : i32
    %c0_i32_1 = arith.constant 0 : i32
    return %c0_i32, %c0_i32_0 : i32, i32
  }
  func.func @transform_2(%arg0: i32) -> (i32, i32) {
    %c0_i32 = arith.constant 0 : i32
    %c0_i32_0 = arith.constant 0 : i32
    %c0_i32_1 = arith.constant 0 : i32
    return %c0_i32, %c0_i32_0 : i32, i32
  }
  func.func @transform_3(%arg0: i32) -> (i32, i32, i32) {
    %c0_i32 = arith.constant 0 : i32
    %c0_i32_0 = arith.constant 0 : i32
    %c0_i32_1 = arith.constant 0 : i32
    %c0_i32_2 = arith.constant 0 : i32
    return %c0_i32, %c0_i32_0, %c0_i32_1 : i32, i32, i32
  }
  func.func @transform_4(%arg0: i32) -> (i32, i32, i32) {
    %c0_i32 = arith.constant 0 : i32
    %c0_i32_0 = arith.constant 0 : i32
    %c0_i32_1 = arith.constant 0 : i32
    %c0_i32_2 = arith.constant 0 : i32
    return %c0_i32, %c0_i32_0, %c0_i32_1 : i32, i32, i32
  }
  func.func @transform_5(%arg0: i32) -> (i32, i32) {
    %c0_i32 = arith.constant 0 : i32
    %c0_i32_0 = arith.constant 0 : i32
    return %c0_i32, %arg0 : i32, i32
  }
}

</mosaic_0001>

<bundles_post_ra>
// kernel: tpu_custom_call.1
= control target key start
LH: loop header
LB: loop body
LE: loop exit
PB: predicated region body
PF: predicated region fallthrough
CT: control target
= control target key end

     0   :  { %10 = vsyncpa [#allocation4], 0  ;;  %s2551_s0 = inlined_call_operand.vmem [shape: bf16[10,1024], index: 0, kind: input, shape index: {}]   ;;  %s2552_s1 = inlined_call_operand.vmem [shape: bf16[32,10], index: 1, kind: input, shape index: {}]   ;;  %s2553_s2 = inlined_call_operand.vmem [shape: f32[32,1], index: 2, kind: input, shape index: {}]   ;;  %s2554_s3 = inlined_call_operand.vmem [shape: bf16[3,32,32], index: 3, kind: input, shape index: {}]   ;;  %s2555_s4 = inlined_call_operand.vmem [shape: f32[3,32,1], index: 4, kind: input, shape index: {}]   ;;  %s2556_s5 = inlined_call_operand.hbm [shape: f32[32,1024], index: 5, kind: output, shape index: {}]  }
   0x1   :  { %12 = vsyncpa [#allocation4 + $0x1], 0  ;;  %s1871_s18 = smov 0   ;;  %s1873_s19 = smov 0  }
   0x2   :  { %s1875_s20 = smov 0   ;;  %s1877_s21 = smov 0  }
   0x3 LB: > { %s1460_s22 = sadd.s32 4294967295, %s1834_s21   ;;  %s1461_s23 = sadd.s32 4294967294, %s1834_s21   ;;  %s1834_s21 = sphi %s1877_s21, %s2571_s21   ;;  %s1830_s20 = sphi %s1875_s20, %s2570_s20   ;;  %s1826_s19 = sphi %s1873_s19, %s2569_s19   ;;  %s1822_s18 = sphi %s1871_s18, %s2568_s18  }
   0x4   : > { %s1894_s24 = sadd.s32 1, %s1834_s21   ;;  %s25_s25 = sadd.s32 1, %s1830_s20 }
   0x5   : > { %s22_s26 = ssub.s32 %s1834_s21, %s1894_s24  ;;  %p32_p0 = scmp.ne.s32.totalorder %s1830_s20, %s1826_s19 }
   0x6   : > { %p23_p1 = scmp.eq.s32.totalorder %s22_s26, 0  ;;  %p33_p2 = scmp.eq.s32.totalorder %s1834_s21, 0 }
   0x7   : > { %p146_p3 = scmp.eq.s32.totalorder %s1460_s22, 1  ;;  %p151_p4 = scmp.ne.s32.totalorder %s1826_s19, %s1822_s18 }
   0x8   : > { %s1907_s27 = scalar_select %p23_p1, %s1830_s20, %s25_s25  }
   0x9   : > { %p34_p5 = por %p33_p2, %p32_p0  ;;  %p1909_p6 = por %p146_p3, %p32_p0 }
   0xa   : > { %p152_p7 = scmp.eq.s32.totalorder %s1461_s23, 1  ;;  %p1463_p9 = scmp.ge.s32.totalorder %s1834_s21, 2 }
   0xc   : > { %p1913_p8 = por %p152_p7, %p151_p4  ;;  %180 = sbr.rel (%p1463_p9) target bundleno = 23 (0x17), region = 32 }
  0x11   : > { %183 = sbr.rel (!%p34_p5) target bundleno = 23 (0x17), region = 36  ;;  %s185_s30 = sand.u32 (%p34_p5), 1, %s1830_s20  }
  0x12   : > { %s1585_s6 = sshll.u32 (%p34_p5), %s1834_s21, 4  ;;  %s1464_s7 = sshll.u32 (%p34_p5), %s185_s30, 5 }
  0x13   : > { %s190_s10 = scalar_lea.vmem (%p34_p5), %s2551_s0, %s1585_s6  ;;  %s187_s11 = scalar_lea.vmem (%p34_p5), [#allocation2], %s1464_s7 }
  0x14   : > { %v203_v0 = vld [vmem:[%s190_s10] sm:$0xff] (%p34_p5)  ;;  %v205_v1 = vld [vmem:[%s190_s10 + $0x8] sm:$0xff] (%p34_p5) }
  0x15   : > { %v207_v2 = vld [vmem:[%s190_s10 + $0x20] sm:$0xff] (%p34_p5)  ;;  %204 = vst [vmem:[%s187_s11] sm:$0xff] (%p34_p5), %v203_v0  ;;  %206 = vst [vmem:[%s187_s11 + $0x8] sm:$0xff] (%p34_p5), %v205_v1  ;;  %v209_v3 = vld [vmem:[%s190_s10 + $0x28] sm:$0xff] (%p34_p5) }
  0x16   : > { %208 = vst [vmem:[%s187_s11 + $0x10] sm:$0xff] %v207_v2  ;;  %210 = vst [vmem:[%s187_s11 + $0x18] sm:$0xff] %v209_v3 }
  0x17 PF: > { %p1467_p10 = scmp.ge.s32.totalorder %s1834_s21, 1  ;;  %p215_p11 = scmp.lt.s32.totalorder %s1834_s21, 3 }
  0x19   : > { %p216_p12 = pnand %p1467_p10, %p215_p11 }
  0x1a   : > { %s1928_s12 = sand.u32 (!%p216_p12), 1, %s1826_s19   ;;  %s1586_s26 = sshll.u32 (!%p216_p12), %s1460_s22, 9 }
  0x1b   : > { %219 = sbr.rel (%p216_p12) target bundleno = 1015 (0x3f7), region = 59  ;;  %s1468_s13 = sshll.u32 (!%p216_p12), %s1928_s12, 5 }
  0x1c   : > { %s224_s14 = scalar_lea.vmem (!%p216_p12), [#allocation2], %s1468_s13  ;;  %s1469_s23 = sshll.u32 (!%p216_p12), %s1928_s12, 7 }
  0x1d   : > { %s2445_s25 = scalar_lea.vmem (!%p216_p12), [#allocation3], %s1469_s23  ;;  %s2501_s7 = scalar_lea.hbm (!%p216_p12), %s2556_s5, %s1586_s26 }
  0x1e   : > { %s1393_s30 = sshll.u32 (!%p216_p12), %s2445_s25, 4  ;;  %s1380_s8 = scalar_lea.sflag (!%p216_p12), [#allocation4], %s1928_s12  ;;  %s2505_s30 = int_to_ptr.vmem [resolvable:$true] %s1393_s30 }
  0x1f   : > { %s1774_s9 = scalar_lea.vmem (!%p216_p12), %s2505_s30, 2048  ;;  %s1837_s10 = smov (!%p216_p12), [#allocation3]  }
  0x20   : > { %v1836_v4 = vmov 0   ;;  %vm317_vm0 = vcmask 1044480   ;;  %v1632_v5 = vld [vmem:[%s224_s14 + $0x4] ss:$16 sps:$4 sm:$0x1f]   ;;  %v263_v10 = vld [vmem:[%s2553_s2 + $0x18] sm:$0xff]  ;;  %p1775_p13 = scmp.ne.s32.totalorder %s2505_s30, %s1774_s9 }
  0x21   : > { %362 = vmatprep.mubr.bf16.mxu0 %v1836_v4  ;;  %415 = vmatprep.mubr.bf16.mxu1 %v1836_v4  ;;  %v262_v6 = vld [vmem:[%s2553_s2 + $0x10] sm:$0xff]  ;;  %v1634_v7 = vld [vmem:[%s224_s14 + $0xc] ss:$16 sps:$4 sm:$0x1f]   ;;  %v260_v11 = vld [vmem:[%s2553_s2] sm:$0xff]  ;;  %vm310_vm1 = vcmask 80896  }
  0x22   : > { %1630 = vset.pattern.permute.xlu0 %v1836_v4  ;;  %1631 = vset.pattern.permute.xlu1 %v1836_v4  ;;  %v1636_v8 = vld [vmem:[%s224_s14] ss:$16 sps:$4 sm:$0x1f]   ;;  %v1637_v9 = vld [vmem:[%s224_s14 + $0x8] ss:$16 sps:$4 sm:$0x1f]   ;;  %p1776_p0 = pnand %p1775_p13, %p1909_p6 }
  0x23   : > { %1476 = vmatprep.subr.msk.bf16.mxu0 %vm317_vm0, %v1632_v5  ;;  %276 = vperm.xlu0 %1630, %v262_v6   ;;  %v319_v12 = vsel %vm317_vm0, %v1636_v8, 0  ;;  %v1638_v13 = vld [vmem:[%s2552_s1] sm:$0xff]   ;;  %v325_v14 = vsel %vm317_vm0, %v1637_v9, 0  ;;  %v261_v15 = vld [vmem:[%s2553_s2 + $0x8] sm:$0xff]  ;;  %v562_v16 = vld [vmem:[%s2555_s4 + $0x10] sm:$0xff]  ;;  %s1778_s11 = sshll.u32 %s1837_s10, 4  ;;  %s1779_s11 = int_to_ptr.vmem [resolvable:$false] %s1778_s11 }
  0x24   : > { %1479 = vmatprep.subr.msk.bf16.mxu1 %vm317_vm0, %v1634_v7  ;;  %266 = vperm.xlu1 %1631, %v260_v11   ;;  %v563_v17 = vld [vmem:[%s2555_s4 + $0x18] sm:$0xff]  ;;  %v560_v18 = vld [vmem:[%s2555_s4] sm:$0xff]  ;;  %v1639_v19 = vld [vmem:[%s2552_s1 + $0x8] sm:$0xff]   ;;  %p1777_p1 = pneg %p1776_p0  ;;  %s1780_s13 = scalar_lea.vmem %s1779_s11, 4096 }
  0x25   : > { %345 = vmatpush1.bf16.msra.mxu0 %v319_v12  ;;  %398 = vmatpush1.bf16.msra.mxu1 %v325_v14  ;;  %v561_v20 = vld [vmem:[%s2555_s4 + $0x8] sm:$0xff]  ;;  %v1526_v21 = vld [vmem:[%s2555_s4 + $0x30] sm:$0xff]  ;;  %v1527_v22 = vld [vmem:[%s2555_s4 + $0x38] sm:$0xff]  ;;  %p1781_p2 = scmp.lt.s32.totalorder %s2505_s30, %s1779_s11  ;;  %p1782_p3 = scmp.lt.s32.totalorder %s1780_s13, %s1774_s9 }
  0x26   : > { %v1524_v23 = vld [vmem:[%s2555_s4 + $0x20] sm:$0xff]  ;;  %v1525_v24 = vld [vmem:[%s2555_s4 + $0x28] sm:$0xff]  ;;  %v1556_v27 = vld [vmem:[%s2555_s4 + $0x50] sm:$0xff] }
  0x27   : > { %281 = vperm.xlu0 %1630, %v263_v10   ;;  %v1554_v25 = vld [vmem:[%s2555_s4 + $0x40] sm:$0xff]  ;;  %v1555_v26 = vld [vmem:[%s2555_s4 + $0x48] sm:$0xff]  ;;  %v1557_v28 = vld [vmem:[%s2555_s4 + $0x58] sm:$0xff]  ;;  %p1783_p4 = por %p1782_p3, %p1781_p2 }
  0x28   : > { %1477 = vmatmul.mubr.msk.bf16.vlgmr.msra.gmra.mxu0 %vm310_vm1, %v1638_v13  ;;  %271 = vperm.xlu1 %1631, %v261_v15  }
  0x29   : > { %1480 = vmatmul.mubr.msk.bf16.vlgmr.msra.gmra.mxu1 %vm310_vm1, %v1638_v13  ;;  %372 = vmatprep.mubr.bf16.mxu0 %v1836_v4  ;;  %p1784_p5 = pnand %p1783_p4, %p1777_p1 }
  0x2a   : > { %425 = vmatprep.mubr.bf16.mxu1 %v1836_v4 }
  0x2b   : > { %576 = vperm.xlu0 %1630, %v562_v16  }
  0x2c   : > { %581 = vperm.xlu1 %1631, %v563_v17  }
  0x2f   : > { %566 = vperm.xlu0 %1630, %v560_v18  }
  0x30   : > { %1478 = vmatmul.mubr.msk.bf16.gmra.mxu0 %vm310_vm1, %v1639_v19  ;;  %571 = vperm.xlu1 %1631, %v561_v20  }
  0x31   : > { %1481 = vmatmul.mubr.msk.bf16.gmra.mxu1 %vm310_vm1, %v1639_v19  ;;  %633 = vmatprep.mubr.bf16.mxu0 %v1836_v4 }
  0x32   : > { %686 = vmatprep.mubr.bf16.mxu1 %v1836_v4 }
  0x33   : > { %849 = vperm.xlu0 %1630, %v1526_v21  }
  0x34   : > { %854 = vperm.xlu1 %1631, %v1527_v22  }
  0x37   : > { %839 = vperm.xlu0 %1630, %v1524_v23  }
  0x38   : > { %844 = vperm.xlu1 %1631, %v1525_v24  }
  0x3b   : > { %1111 = vperm.xlu0 %1630, %v1554_v25  }
  0x3c   : > { %1116 = vperm.xlu1 %1631, %v1555_v26  }
  0x3f   : > { %1121 = vperm.xlu0 %1630, %v1556_v27  }
  0x40   : > { %1126 = vperm.xlu1 %1631, %v1557_v28  }
  0x9e   : > { %v277_v45 = vpop.permute.xlu0 %276 }
  0x9f   : > { %v267_v29 = vpop.permute.xlu1 %266 }
  0xa2   : > { %v282_v0 = vpop.permute.xlu0 %281 }
  0xa3   : > { %v272_v38 = vpop.permute.xlu1 %271 }
  0xe8   : > { %v364_v30 = vpop.f32.mrf.mxu0 }
  0xe9   : > { %v2001_v31 = vadd.f32 %v364_v30, %v267_v29  ;;  %v417_v32 = vpop.f32.mrf.mxu1 }
  0xea   : > { %v2003_v33 = vadd.f32 %v417_v32, %v267_v29  ;;  %v366_v34 = vpop.f32.mrf.mxu0 }
  0xeb   : > { %v452_v35 = vmul.f32 1.442695, %v2001_v31  ;;  %v2006_v36 = vadd.f32 %v366_v34, %v267_v29  ;;  %v419_v37 = vpop.f32.mrf.mxu1  ;;  %vm436_vm2 = vcmp.gt.f32.partialorder %v2001_v31, 0.0 }
  0xec   : > { %v456_v39 = vmul.f32 1.442695, %v2003_v33  ;;  %v2009_v40 = vadd.f32 %v419_v37, %v267_v29  ;;  %v368_v41 = vpop.f32.mrf.mxu0  ;;  %vm438_vm1 = vcmp.gt.f32.partialorder %v2003_v33, 0.0 }
  0xed   : > { %1646 = vpow2.f32 %v452_v35  ;;  %v454_v42 = vmul.f32 1.442695, %v2006_v36  ;;  %v2012_v43 = vadd.f32 %v368_v41, %v272_v38  ;;  %v421_v44 = vpop.f32.mrf.mxu1  ;;  %vm437_vm3 = vcmp.gt.f32.partialorder %v2006_v36, 0.0 }
  0xee   : > { %1648 = vpow2.f32 %v456_v39  ;;  %v458_v46 = vmul.f32 1.442695, %v2009_v40  ;;  %v2015_v47 = vadd.f32 %v421_v44, %v272_v38  ;;  %v370_v48 = vpop.f32.mrf.mxu0  ;;  %vm439_vm12 = vcmp.gt.f32.partialorder %v2009_v40, 0.0 }
  0xef   : > { %1650 = vpow2.f32 %v454_v42  ;;  %v460_v49 = vmul.f32 1.442695, %v2012_v43  ;;  %v2018_v50 = vadd.f32 %v370_v48, %v272_v38  ;;  %v423_v51 = vpop.f32.mrf.mxu1  ;;  %vm440_vm5 = vcmp.gt.f32.partialorder %v2012_v43, 0.0 }
  0xf0   : > { %1652 = vpow2.f32 %v458_v46  ;;  %v464_v52 = vmul.f32 1.442695, %v2015_v47  ;;  %v2021_v53 = vadd.f32 %v423_v51, %v272_v38  ;;  %v374_v54 = vpop.f32.mrf.mxu0  ;;  %vm442_vm15 = vcmp.gt.f32.partialorder %v2015_v47, 0.0 }
  0xf1   : > { %1654 = vpow2.f32 %v460_v49  ;;  %v462_v55 = vmul.f32 1.442695, %v2018_v50  ;;  %v2024_v56 = vadd.f32 %v374_v54, %v277_v45  ;;  %v427_v57 = vpop.f32.mrf.mxu1  ;;  %vm441_vm4 = vcmp.gt.f32.partialorder %v2018_v50, 0.0 }
  0xf2   : > { %1656 = vpow2.f32 %v464_v52  ;;  %v466_v58 = vmul.f32 1.442695, %v2021_v53  ;;  %v2027_v59 = vadd.f32 %v427_v57, %v277_v45  ;;  %v376_v60 = vpop.f32.mrf.mxu0  ;;  %vm443_vm9 = vcmp.gt.f32.partialorder %v2021_v53, 0.0 }
  0xf3   : > { %1658 = vpow2.f32 %v462_v55  ;;  %v468_v61 = vmul.f32 1.442695, %v2024_v56  ;;  %v2030_v62 = vadd.f32 %v376_v60, %v277_v45  ;;  %v429_v63 = vpop.f32.mrf.mxu1  ;;  %vm444_vm6 = vcmp.gt.f32.partialorder %v2024_v56, 0.0 }
  0xf4   : > { %1660 = vpow2.f32 %v466_v58  ;;  %v472_v1 = vmul.f32 1.442695, %v2027_v59  ;;  %v2033_v2 = vadd.f32 %v429_v63, %v277_v45  ;;  %v378_v3 = vpop.f32.mrf.mxu0  ;;  %vm446_vm13 = vcmp.gt.f32.partialorder %v2027_v59, 0.0 }
  0xf5   : > { %1662 = vpow2.f32 %v468_v61  ;;  %v470_v5 = vmul.f32 1.442695, %v2030_v62  ;;  %v2036_v6 = vadd.f32 %v378_v3, %v282_v0  ;;  %v431_v7 = vpop.f32.mrf.mxu1  ;;  %vm445_vm7 = vcmp.gt.f32.partialorder %v2030_v62, 0.0 }
  0xf6   : > { %1664 = vpow2.f32 %v472_v1  ;;  %v474_v8 = vmul.f32 1.442695, %v2033_v2  ;;  %v2039_v9 = vadd.f32 %v431_v7, %v282_v0  ;;  %v380_v10 = vpop.f32.mrf.mxu0  ;;  %vm447_vm11 = vcmp.gt.f32.partialorder %v2033_v2, 0.0 }
  0xf7   : > { %1666 = vpow2.f32 %v470_v5  ;;  %v476_v11 = vmul.f32 1.442695, %v2036_v6  ;;  %v2042_v12 = vadd.f32 %v380_v10, %v282_v0  ;;  %v433_v13 = vpop.f32.mrf.mxu1  ;;  %vm448_vm8 = vcmp.gt.f32.partialorder %v2036_v6, 0.0 }
  0xf8   : > { %1668 = vpow2.f32 %v474_v8  ;;  %v480_v14 = vmul.f32 1.442695, %v2039_v9  ;;  %v2045_v15 = vadd.f32 %v433_v13, %v282_v0  ;;  %vm450_vm10 = vcmp.gt.f32.partialorder %v2039_v9, 0.0 }
  0xf9   : > { %1670 = vpow2.f32 %v476_v11  ;;  %v478_v16 = vmul.f32 1.442695, %v2042_v12  ;;  %vm449_vm14 = vcmp.gt.f32.partialorder %v2042_v12, 0.0 }
  0xfa   : > { %v1647_v17 = vpop.eup %1646  ;;  %1672 = vpow2.f32 %v480_v14  ;;  %v482_v18 = vmul.f32 1.442695, %v2045_v15  ;;  %vm451_vm0 = vcmp.gt.f32.partialorder %v2045_v15, 0.0 }
  0xfb   : > { %v1649_v19 = vpop.eup %1648  ;;  %1674 = vpow2.f32 %v478_v16  ;;  %v1482_v28 = vadd.f32 -1.0, %v1647_v17 }
  0xfc   : > { %v1651_v20 = vpop.eup %1650  ;;  %1676 = vpow2.f32 %v482_v18  ;;  %v1484_v32 = vadd.f32 -1.0, %v1649_v19 }
  0xfd   : > { %v1653_v21 = vpop.eup %1652  ;;  %v1483_v22 = vadd.f32 -1.0, %v1651_v20  ;;  %v500_v45 = vmul.f32 1.6732632, %v1482_v28 }
  0xfe   : > { %v1655_v23 = vpop.eup %1654  ;;  %v1485_v34 = vadd.f32 -1.0, %v1653_v21  ;;  %v502_v52 = vmul.f32 1.6732632, %v1484_v32 }
  0xff   : > { %v1657_v24 = vpop.eup %1656  ;;  %v501_v26 = vmul.f32 1.6732632, %v1483_v22  ;;  %v1486_v37 = vadd.f32 -1.0, %v1655_v23  ;;  %v516_v13 = vsel %vm436_vm2, %v2001_v31, %v500_v45  ;;  %vm2557_vm2 = vcmask 261120  }
 0x100   : > { %v1659_v25 = vpop.eup %1658  ;;  %v1488_v41 = vadd.f32 -1.0, %v1657_v24  ;;  %v503_v54 = vmul.f32 1.6732632, %v1485_v34 }
 0x101   : > { %v1661_v27 = vpop.eup %1660  ;;  %v1487_v29 = vadd.f32 -1.0, %v1659_v25  ;;  %v517_v39 = vsel %vm437_vm3, %v2006_v36, %v501_v26  ;;  %v504_v58 = vmul.f32 1.6732632, %v1486_v37 }
 0x102   : > { %v1663_v30 = vpop.eup %1662  ;;  %v1489_v48 = vadd.f32 -1.0, %v1661_v27  ;;  %v533_v57 = vmul.f32 1.050701, %v517_v39  ;;  %v506_v63 = vmul.f32 1.6732632, %v1488_v41  ;;  %v518_v41 = vsel %vm438_vm1, %v2003_v33, %v502_v52  ;;  %v1641_v33 = vld [vmem:[%s2554_s3 + $0x8] sm:$0xff]   ;;  %v577_v52 = vpop.permute.xlu0 %576 }
 0x103   : > { %v1665_v35 = vpop.eup %1664  ;;  %v1490_v42 = vadd.f32 -1.0, %v1663_v30  ;;  %v505_v46 = vmul.f32 1.6732632, %v1487_v29 }
 0x104   : > { %v1667_v38 = vpop.eup %1666  ;;  %v1492_v36 = vadd.f32 -1.0, %v1665_v35  ;;  %v507_v8 = vmul.f32 1.6732632, %v1489_v48  ;;  %v534_v48 = vmul.f32 1.050701, %v518_v41 }
 0x105   : > { %v1669_v44 = vpop.eup %1668  ;;  %v1491_v49 = vadd.f32 -1.0, %v1667_v38  ;;  %v508_v0 = vmul.f32 1.6732632, %v1490_v42  ;;  %v521_v7 = vsel %vm441_vm4, %v2018_v50, %v505_v46  ;;  %v520_v50 = vsel %vm440_vm5, %v2012_v43, %v504_v58 }
 0x106   : > { %v1671_v51 = vpop.eup %1670  ;;  %v1493_v1 = vadd.f32 -1.0, %v1669_v44  ;;  %v510_v14 = vmul.f32 1.6732632, %v1492_v36  ;;  %v537_v22 = vmul.f32 1.050701, %v521_v7  ;;  %v567_v36 = vpop.permute.xlu0 %566 }
 0x107   : > { %v1673_v55 = vpop.eup %1672  ;;  %v509_v60 = vmul.f32 1.6732632, %v1491_v49  ;;  %v1494_v3 = vadd.f32 -1.0, %v1671_v51  ;;  %v524_v23 = vsel %vm444_vm6, %v2024_v56, %v508_v0  ;;  %v536_v28 = vmul.f32 1.050701, %v520_v50  ;;  %v1640_v49 = vld [vmem:[%s2554_s3] sm:$0xff]  }
 0x108   : > { %v1675_v61 = vpop.eup %1674  ;;  %v1496_v10 = vadd.f32 -1.0, %v1673_v55  ;;  %v511_v16 = vmul.f32 1.6732632, %v1493_v1  ;;  %v540_v29 = vmul.f32 1.050701, %v524_v23  ;;  %v553_v39 = vpack.c.bf16 %v537_v22, %v533_v57 }
 0x109   : > { %v1677_v5 = vpop.eup %1676  ;;  %v1495_v11 = vadd.f32 -1.0, %v1675_v61  ;;  %v512_v17 = vmul.f32 1.6732632, %v1494_v3  ;;  %v525_v18 = vsel %vm445_vm7, %v2030_v62, %v509_v60  ;;  %v523_v62 = vsel %vm443_vm9, %v2021_v53, %v507_v8 }
 0x10a   : > { %v514_v19 = vmul.f32 1.6732632, %v1496_v10  ;;  %v1497_v21 = vadd.f32 -1.0, %v1677_v5  ;;  %v541_v26 = vmul.f32 1.050701, %v525_v18  ;;  %v527_v56 = vsel %vm447_vm11, %v2033_v2, %v511_v16 }
 0x10b   : > { %v513_v20 = vmul.f32 1.6732632, %v1495_v11  ;;  %v528_v31 = vsel %vm448_vm8, %v2036_v6, %v512_v17  ;;  %v519_v53 = vsel %vm439_vm12, %v2009_v40, %v503_v54  ;;  %v539_v34 = vmul.f32 1.050701, %v523_v62  ;;  %v582_v54 = vpop.permute.xlu1 %581 }
 0x10c   : > { %v544_v24 = vmul.f32 1.050701, %v528_v31  ;;  %v530_v25 = vsel %vm450_vm10, %v2039_v9, %v514_v19  ;;  %v515_v6 = vmul.f32 1.6732632, %v1497_v21  ;;  %v526_v9 = vsel %vm446_vm13, %v2027_v59, %v510_v14 }
 0x10d   : > { %v529_v43 = vsel %vm449_vm14, %v2042_v12, %v513_v20  ;;  %v522_v12 = vsel %vm442_vm15, %v2015_v47, %v506_v63  ;;  %v546_v30 = vmul.f32 1.050701, %v530_v25  ;;  %v543_v35 = vmul.f32 1.050701, %v527_v56 }
 0x10e   : > { %v545_v27 = vmul.f32 1.050701, %v529_v43  ;;  %v531_v2 = vsel %vm451_vm0, %v2045_v15, %v515_v6  ;;  %v556_v37 = vpack.c.bf16 %v544_v24, %v540_v29  ;;  %v542_v38 = vmul.f32 1.050701, %v526_v9 }
 0x10f   : > { %v547_v40 = vmul.f32 1.050701, %v531_v2  ;;  %v532_v59 = vmul.f32 1.050701, %v516_v13  ;;  %v535_v42 = vmul.f32 1.050701, %v519_v53  ;;  %v572_v0 = vpop.permute.xlu1 %571 }
 0x110   : > { %v557_v32 = vpack.c.bf16 %v545_v27, %v541_v26  ;;  %v538_v44 = vmul.f32 1.050701, %v522_v12  ;;  %v558_v45 = vpack.c.bf16 %v546_v30, %v542_v38 }
 0x111   : > { %v559_v47 = vpack.c.bf16 %v547_v40, %v543_v35  ;;  %v552_v15 = vpack.c.bf16 %v536_v28, %v532_v59  ;;  %v555_v46 = vpack.c.bf16 %v539_v34, %v535_v42 }
 0x112   : > { %613 = vmatprep.subr.bf16.mxu0 %v557_v32  ;;  %v554_v51 = vpack.c.bf16 %v538_v44, %v534_v48 }
 0x113   : > { %614 = vmatpush1.bf16.msra.mxu0 %v556_v37  ;;  %666 = vmatprep.subr.bf16.mxu1 %v559_v47 }
 0x114   : > { %615 = vmatprep.subr.bf16.mxu0 %v553_v39  ;;  %667 = vmatpush1.bf16.msra.mxu1 %v558_v45 }
 0x115   : > { %668 = vmatprep.subr.bf16.mxu1 %v555_v46 }
 0x117   : > { %616 = vmatpush1.bf16.msra.mxu0 %v552_v15 }
 0x118   : > { %669 = vmatpush1.bf16.msra.mxu1 %v554_v51 }
 0x11a   : > { %1500 = vmatmul.mubr.msk.bf16.vlgmr.msra.gmra.mxu0 %vm2557_vm2, %v1640_v49 }
 0x11b   : > { %643 = vmatprep.mubr.bf16.mxu0 %v1836_v4  ;;  %1502 = vmatmul.mubr.msk.bf16.vlgmr.msra.gmra.mxu1 %vm2557_vm2, %v1640_v49 }
 0x11c   : > { %696 = vmatprep.mubr.bf16.mxu1 %v1836_v4 }
 0x122   : > { %1501 = vmatmul.mubr.msk.bf16.gmra.mxu0 %vm2557_vm2, %v1641_v33 }
 0x123   : > { %905 = vmatprep.mubr.bf16.mxu0 %v1836_v4  ;;  %1503 = vmatmul.mubr.msk.bf16.gmra.mxu1 %vm2557_vm2, %v1641_v33 }
 0x124   : > { %958 = vmatprep.mubr.bf16.mxu1 %v1836_v4 }
 0x1da   : > { %v635_v55 = vpop.f32.mrf.mxu0 }
 0x1db   : > { %v2123_v57 = vadd.f32 %v635_v55, %v567_v36  ;;  %v688_v61 = vpop.f32.mrf.mxu1 }
 0x1dc   : > { %v637_v58 = vpop.f32.mrf.mxu0  ;;  %v2128_v1 = vadd.f32 %v688_v61, %v567_v36 }
 0x1dd   : > { %v723_v60 = vmul.f32 1.442695, %v2123_v57  ;;  %v2126_v63 = vadd.f32 %v637_v58, %v567_v36  ;;  %v690_v7 = vpop.f32.mrf.mxu1  ;;  %vm707_vm1 = vcmp.gt.f32.partialorder %v2123_v57, 0.0 }
 0x1de   : > { %v639_v3 = vpop.f32.mrf.mxu0  ;;  %v727_v10 = vmul.f32 1.442695, %v2128_v1  ;;  %v2134_v11 = vadd.f32 %v690_v7, %v567_v36  ;;  %vm709_vm2 = vcmp.gt.f32.partialorder %v2128_v1, 0.0 }
 0x1df   : > { %v725_v5 = vmul.f32 1.442695, %v2126_v63  ;;  %v2131_v8 = vadd.f32 %v639_v3, %v572_v0  ;;  %1678 = vpow2.f32 %v723_v60  ;;  %v692_v16 = vpop.f32.mrf.mxu1  ;;  %vm708_vm3 = vcmp.gt.f32.partialorder %v2126_v63, 0.0 }
 0x1e0   : > { %v641_v13 = vpop.f32.mrf.mxu0  ;;  %v729_v18 = vmul.f32 1.442695, %v2134_v11  ;;  %v2140_v19 = vadd.f32 %v692_v16, %v572_v0  ;;  %vm710_vm5 = vcmp.gt.f32.partialorder %v2134_v11, 0.0 }
 0x1e1   : > { %1680 = vpow2.f32 %v725_v5  ;;  %v731_v14 = vmul.f32 1.442695, %v2131_v8  ;;  %v2137_v17 = vadd.f32 %v641_v13, %v572_v0  ;;  %v694_v50 = vpop.f32.mrf.mxu1  ;;  %vm711_vm4 = vcmp.gt.f32.partialorder %v2131_v8, 0.0 }
 0x1e2   : > { %1682 = vpow2.f32 %v727_v10  ;;  %v645_v20 = vpop.f32.mrf.mxu0  ;;  %v735_v23 = vmul.f32 1.442695, %v2140_v19  ;;  %v2146_v31 = vadd.f32 %v694_v50, %v572_v0  ;;  %vm713_vm0 = vcmp.gt.f32.partialorder %v2140_v19, 0.0 }
 0x1e3   : > { %1684 = vpow2.f32 %v731_v14  ;;  %v733_v21 = vmul.f32 1.442695, %v2137_v17  ;;  %v2143_v22 = vadd.f32 %v645_v20, %v577_v52  ;;  %v698_v25 = vpop.f32.mrf.mxu1  ;;  %vm712_vm6 = vcmp.gt.f32.partialorder %v2137_v17, 0.0 }
 0x1e4   : > { %1686 = vpow2.f32 %v729_v18  ;;  %v647_v62 = vpop.f32.mrf.mxu0  ;;  %v737_v26 = vmul.f32 1.442695, %v2146_v31  ;;  %v2152_v56 = vadd.f32 %v698_v25, %v577_v52  ;;  %vm714_vm7 = vcmp.gt.f32.partialorder %v2146_v31, 0.0 }
 0x1e5   : > { %1688 = vpow2.f32 %v733_v21  ;;  %v739_v24 = vmul.f32 1.442695, %v2143_v22  ;;  %v2149_v43 = vadd.f32 %v647_v62, %v577_v52  ;;  %v700_v53 = vpop.f32.mrf.mxu1  ;;  %vm715_vm10 = vcmp.gt.f32.partialorder %v2143_v22, 0.0 }
 0x1e6   : > { %1690 = vpow2.f32 %v735_v23  ;;  %v649_v27 = vpop.f32.mrf.mxu0  ;;  %v743_v29 = vmul.f32 1.442695, %v2152_v56  ;;  %v2158_v9 = vadd.f32 %v700_v53, %v577_v52  ;;  %vm717_vm11 = vcmp.gt.f32.partialorder %v2152_v56, 0.0 }
 0x1e7   : > { %1692 = vpow2.f32 %v739_v24  ;;  %v741_v6 = vmul.f32 1.442695, %v2149_v43  ;;  %v2155_v28 = vadd.f32 %v649_v27, %v582_v54  ;;  %v702_v2 = vpop.f32.mrf.mxu1  ;;  %vm716_vm8 = vcmp.gt.f32.partialorder %v2149_v43, 0.0 }
 0x1e8   : > { %1694 = vpow2.f32 %v737_v26  ;;  %v651_v12 = vpop.f32.mrf.mxu0  ;;  %v745_v34 = vmul.f32 1.442695, %v2158_v9  ;;  %v2164_v35 = vadd.f32 %v702_v2, %v582_v54  ;;  %vm718_vm12 = vcmp.gt.f32.partialorder %v2158_v9, 0.0 }
 0x1e9   : > { %1696 = vpow2.f32 %v741_v6  ;;  %v747_v30 = vmul.f32 1.442695, %v2155_v28  ;;  %v2161_v32 = vadd.f32 %v651_v12, %v582_v54  ;;  %v704_v40 = vpop.f32.mrf.mxu1  ;;  %vm719_vm9 = vcmp.gt.f32.partialorder %v2155_v28, 0.0 }
 0x1ea   : > { %1698 = vpow2.f32 %v743_v29  ;;  %v751_v38 = vmul.f32 1.442695, %v2164_v35  ;;  %v2168_v39 = vadd.f32 %v704_v40, %v582_v54  ;;  %vm721_vm13 = vcmp.gt.f32.partialorder %v2164_v35, 0.0 }
 0x1eb   : > { %1700 = vpow2.f32 %v747_v30  ;;  %v749_v37 = vmul.f32 1.442695, %v2161_v32  ;;  %vm720_vm14 = vcmp.gt.f32.partialorder %v2161_v32, 0.0 }
 0x1ec   : > { %1702 = vpow2.f32 %v745_v34  ;;  %v1679_v59 = vpop.eup %1678  ;;  %v753_v42 = vmul.f32 1.442695, %v2168_v39  ;;  %vm722_vm15 = vcmp.gt.f32.partialorder %v2168_v39, 0.0 }
 0x1ed   : > { %1704 = vpow2.f32 %v749_v37  ;;  %v1504_v60 = vadd.f32 -1.0, %v1679_v59 }
 0x1ee   : > { %v1681_v41 = vpop.eup %1680  ;;  %1706 = vpow2.f32 %v751_v38 }
 0x1ef   : > { %v1683_v47 = vpop.eup %1682  ;;  %1708 = vpow2.f32 %v753_v42  ;;  %v1505_v48 = vadd.f32 -1.0, %v1681_v41  ;;  %v771_v25 = vmul.f32 1.6732632, %v1504_v60 }
 0x1f0   : > { %v1685_v44 = vpop.eup %1684  ;;  %v1506_v61 = vadd.f32 -1.0, %v1683_v47 }
 0x1f1   : > { %v1687_v45 = vpop.eup %1686  ;;  %v1508_v54 = vadd.f32 -1.0, %v1685_v44  ;;  %v772_v0 = vmul.f32 1.6732632, %v1505_v48 }
 0x1f2   : > { %v1689_v15 = vpop.eup %1688  ;;  %v1507_v52 = vadd.f32 -1.0, %v1687_v45  ;;  %v773_v26 = vmul.f32 1.6732632, %v1506_v61 }
 0x1f3   : > { %v1691_v46 = vpop.eup %1690  ;;  %v1509_v51 = vadd.f32 -1.0, %v1689_v15  ;;  %v775_v16 = vmul.f32 1.6732632, %v1508_v54  ;;  %v788_v27 = vsel %vm708_vm3, %v2126_v63, %v772_v0 }
 0x1f4   : > { %v1693_v49 = vpop.eup %1692  ;;  %v774_v14 = vmul.f32 1.6732632, %v1507_v52  ;;  %v1510_v6 = vadd.f32 -1.0, %v1691_v46 }
 0x1f5   : > { %v1695_v33 = vpop.eup %1694  ;;  %v776_v7 = vmul.f32 1.6732632, %v1509_v51  ;;  %v1512_v10 = vadd.f32 -1.0, %v1693_v49  ;;  %v791_v34 = vsel %vm711_vm4, %v2131_v8, %v775_v16  ;;  %v1642_v16 = vld [vmem:[%s2554_s3 + $0x10] sm:$0xff]  }
 0x1f6   : > { %v1697_v36 = vpop.eup %1696  ;;  %v1511_v55 = vadd.f32 -1.0, %v1695_v33  ;;  %v790_v63 = vsel %vm710_vm5, %v2134_v11, %v774_v14  ;;  %v777_v42 = vmul.f32 1.6732632, %v1510_v6  ;;  %v807_v0 = vmul.f32 1.050701, %v791_v34 }
 0x1f7   : > { %v1699_v58 = vpop.eup %1698  ;;  %v1513_v3 = vadd.f32 -1.0, %v1697_v36  ;;  %v792_v53 = vsel %vm712_vm6, %v2137_v17, %v776_v7  ;;  %v779_v29 = vmul.f32 1.6732632, %v1512_v10  ;;  %v789_v36 = vsel %vm709_vm2, %v2128_v1, %v773_v26 }
 0x1f8   : > { %v1701_v5 = vpop.eup %1700  ;;  %v1514_v18 = vadd.f32 -1.0, %v1699_v58  ;;  %v778_v21 = vmul.f32 1.6732632, %v1511_v55  ;;  %v808_v47 = vmul.f32 1.050701, %v792_v53  ;;  %v793_v33 = vsel %vm713_vm0, %v2140_v19, %v777_v42 }
 0x1f9   : > { %v1703_v13 = vpop.eup %1702  ;;  %v780_v50 = vmul.f32 1.6732632, %v1513_v3  ;;  %v1516_v62 = vadd.f32 -1.0, %v1701_v5  ;;  %v795_v11 = vsel %vm715_vm10, %v2143_v22, %v779_v29  ;;  %v804_v58 = vmul.f32 1.050701, %v788_v27 }
 0x1fa   : > { %v1705_v20 = vpop.eup %1704  ;;  %v1515_v23 = vadd.f32 -1.0, %v1703_v13  ;;  %v781_v37 = vmul.f32 1.6732632, %v1514_v18  ;;  %v794_v59 = vsel %vm714_vm7, %v2146_v31, %v778_v21  ;;  %v806_v60 = vmul.f32 1.050701, %v790_v63  ;;  %v1643_v18 = vld [vmem:[%s2554_s3 + $0x18] sm:$0xff]   ;;  %v855_v21 = vpop.permute.xlu1 %854 }
 0x1fb   : > { %v1707_v24 = vpop.eup %1706  ;;  %v783_v30 = vmul.f32 1.6732632, %v1516_v62  ;;  %v1517_v38 = vadd.f32 -1.0, %v1705_v20  ;;  %v796_v17 = vsel %vm716_vm8, %v2149_v43, %v780_v50  ;;  %v810_v46 = vmul.f32 1.050701, %v794_v59  ;;  %v850_v20 = vpop.permute.xlu0 %849 }
 0x1fc   : > { %v782_v12 = vmul.f32 1.6732632, %v1515_v23  ;;  %v1709_v2 = vpop.eup %1708  ;;  %v1518_v40 = vadd.f32 -1.0, %v1707_v24  ;;  %v797_v43 = vsel %vm717_vm11, %v2152_v56, %v781_v37  ;;  %v812_v48 = vmul.f32 1.050701, %v796_v17 }
 0x1fd   : > { %v1519_v41 = vadd.f32 -1.0, %v1709_v2  ;;  %v799_v8 = vsel %vm719_vm9, %v2155_v28, %v783_v30  ;;  %v784_v45 = vmul.f32 1.6732632, %v1517_v38  ;;  %v813_v55 = vmul.f32 1.050701, %v797_v43 }
 0x1fe   : > { %v785_v44 = vmul.f32 1.6732632, %v1518_v40  ;;  %v798_v31 = vsel %vm718_vm12, %v2158_v9, %v782_v12  ;;  %v815_v49 = vmul.f32 1.050701, %v799_v8  ;;  %v809_v3 = vmul.f32 1.050701, %v793_v33  ;;  %v845_v6 = vpop.permute.xlu1 %844 }
 0x1ff   : > { %v786_v15 = vmul.f32 1.6732632, %v1519_v41  ;;  %v800_v22 = vsel %vm720_vm14, %v2161_v32, %v784_v45  ;;  %v814_v56 = vmul.f32 1.050701, %v798_v31  ;;  %v811_v32 = vmul.f32 1.050701, %v795_v11  ;;  %v840_v50 = vpop.permute.xlu0 %839 }
 0x200   : > { %v801_v28 = vsel %vm721_vm13, %v2164_v35, %v785_v44  ;;  %v816_v52 = vmul.f32 1.050701, %v800_v22  ;;  %v787_v35 = vsel %vm707_vm1, %v2123_v57, %v771_v25  ;;  %v825_v7 = vpack.c.bf16 %v808_v47, %v804_v58 }
 0x201   : > { %v817_v51 = vmul.f32 1.050701, %v801_v28  ;;  %v802_v9 = vsel %vm722_vm15, %v2168_v39, %v786_v15  ;;  %v828_v19 = vpack.c.bf16 %v815_v49, %v811_v32  ;;  %v827_v10 = vpack.c.bf16 %v810_v46, %v806_v60 }
 0x202   : > { %v818_v54 = vmul.f32 1.050701, %v802_v9  ;;  %v829_v39 = vpack.c.bf16 %v816_v52, %v812_v48  ;;  %v803_v13 = vmul.f32 1.050701, %v787_v35  ;;  %v805_v57 = vmul.f32 1.050701, %v789_v36 }
 0x203   : > { %v830_v5 = vpack.c.bf16 %v817_v51, %v813_v55  ;;  %vm2560_vm2 = vcmask 261120  }
 0x204   : > { %v831_v61 = vpack.c.bf16 %v818_v54, %v814_v56  ;;  %885 = vmatprep.subr.bf16.mxu0 %v829_v39  ;;  %v824_v1 = vpack.c.bf16 %v807_v0, %v803_v13  ;;  %v826_v14 = vpack.c.bf16 %v809_v3, %v805_v57  ;;  %vm2561_vm3 = vmmov %vm2560_vm2 }
 0x205   : > { %886 = vmatpush1.bf16.msra.mxu0 %v828_v19  ;;  %vm2562_vm4 = vmmov %vm2560_vm2 }
 0x206   : > { %938 = vmatprep.subr.bf16.mxu1 %v831_v61  ;;  %887 = vmatprep.subr.bf16.mxu0 %v825_v7  ;;  %vm2563_vm5 = vmmov %vm2560_vm2 }
 0x207   : > { %939 = vmatpush1.bf16.msra.mxu1 %v830_v5 }
 0x208   : > { %940 = vmatprep.subr.bf16.mxu1 %v827_v10 }
 0x209   : > { %888 = vmatpush1.bf16.msra.mxu0 %v824_v1 }
 0x20b   : > { %941 = vmatpush1.bf16.msra.mxu1 %v826_v14 }
 0x20c   : > { %1530 = vmatmul.mubr.msk.bf16.vlgmr.msra.gmra.mxu0 %vm2560_vm2, %v1642_v16 }
 0x20d   : > { %915 = vmatprep.mubr.bf16.mxu0 %v1836_v4 }
 0x20e   : > { %1532 = vmatmul.mubr.msk.bf16.vlgmr.msra.gmra.mxu1 %vm2561_vm3, %v1642_v16 }
 0x20f   : > { %968 = vmatprep.mubr.bf16.mxu1 %v1836_v4 }
 0x214   : > { %1531 = vmatmul.mubr.msk.bf16.gmra.mxu0 %vm2562_vm4, %v1643_v18 }
 0x215   : > { %1177 = vmatprep.mubr.bf16.mxu0 %v1836_v4 }
 0x216   : > { %1533 = vmatmul.mubr.msk.bf16.gmra.mxu1 %vm2563_vm5, %v1643_v18 }
 0x217   : > { %1230 = vmatprep.mubr.bf16.mxu1 %v1836_v4 }
 0x2cc   : > { %v907_v23 = vpop.f32.mrf.mxu0 }
 0x2cd   : > { %v2249_v24 = vadd.f32 %v907_v23, %v840_v50 }
 0x2ce   : > { %v960_v62 = vpop.f32.mrf.mxu1  ;;  %v909_v26 = vpop.f32.mrf.mxu0 }
 0x2cf   : > { %v2251_v25 = vadd.f32 %v960_v62, %v840_v50  ;;  %v995_v53 = vmul.f32 1.442695, %v2249_v24  ;;  %v2255_v12 = vadd.f32 %v909_v26, %v840_v50  ;;  %vm979_vm6 = vcmp.gt.f32.partialorder %v2249_v24, 0.0 }
 0x2d0   : > { %v962_v27 = vpop.f32.mrf.mxu1  ;;  %v911_v2 = vpop.f32.mrf.mxu0 }
 0x2d1   : > { %v999_v29 = vmul.f32 1.442695, %v2251_v25  ;;  %v2257_v30 = vadd.f32 %v962_v27, %v840_v50  ;;  %v2259_v37 = vadd.f32 %v911_v2, %v845_v6  ;;  %1710 = vpow2.f32 %v995_v53 }
 0x2d2   : > { %v964_v34 = vpop.f32.mrf.mxu1  ;;  %v997_v38 = vmul.f32 1.442695, %v2255_v12  ;;  %v913_v63 = vpop.f32.mrf.mxu0  ;;  %vm980_vm7 = vcmp.gt.f32.partialorder %v2255_v12, 0.0  ;;  %vm981_vm5 = vcmp.gt.f32.partialorder %v2251_v25, 0.0 }
 0x2d3   : > { %v2261_v40 = vadd.f32 %v964_v34, %v845_v6  ;;  %1712 = vpow2.f32 %v999_v29  ;;  %v1001_v17 = vmul.f32 1.442695, %v2257_v30  ;;  %v1003_v41 = vmul.f32 1.442695, %v2259_v37 }
 0x2d4   : > { %v966_v59 = vpop.f32.mrf.mxu1  ;;  %1714 = vpow2.f32 %v997_v38  ;;  %v2267_v47 = vadd.f32 %v913_v63, %v845_v6  ;;  %v917_v44 = vpop.f32.mrf.mxu0  ;;  %vm982_vm8 = vcmp.gt.f32.partialorder %v2257_v30, 0.0  ;;  %vm983_vm9 = vcmp.gt.f32.partialorder %v2259_v37, 0.0 }
 0x2d5   : > { %v1007_v42 = vmul.f32 1.442695, %v2261_v40  ;;  %v2269_v8 = vadd.f32 %v966_v59, %v845_v6  ;;  %1716 = vpow2.f32 %v1001_v17  ;;  %v2271_v31 = vadd.f32 %v917_v44, %v850_v20 }
 0x2d6   : > { %v970_v11 = vpop.f32.mrf.mxu1  ;;  %1718 = vpow2.f32 %v1003_v41  ;;  %v1005_v15 = vmul.f32 1.442695, %v2267_v47  ;;  %v919_v46 = vpop.f32.mrf.mxu0  ;;  %vm984_vm10 = vcmp.gt.f32.partialorder %v2267_v47, 0.0  ;;  %vm985_vm4 = vcmp.gt.f32.partialorder %v2261_v40, 0.0 }
 0x2d7   : > { %v2273_v45 = vadd.f32 %v970_v11, %v850_v20  ;;  %1720 = vpow2.f32 %v1007_v42  ;;  %v1009_v48 = vmul.f32 1.442695, %v2269_v8  ;;  %v1011_v28 = vmul.f32 1.442695, %v2271_v31 }
 0x2d8   : > { %v972_v43 = vpop.f32.mrf.mxu1  ;;  %1722 = vpow2.f32 %v1005_v15  ;;  %v2279_v51 = vadd.f32 %v919_v46, %v850_v20  ;;  %v921_v22 = vpop.f32.mrf.mxu0  ;;  %vm986_vm11 = vcmp.gt.f32.partialorder %v2269_v8, 0.0  ;;  %vm987_vm13 = vcmp.gt.f32.partialorder %v2271_v31, 0.0 }
 0x2d9   : > { %v1015_v49 = vmul.f32 1.442695, %v2273_v45  ;;  %1724 = vpow2.f32 %v1009_v48  ;;  %v2281_v33 = vadd.f32 %v972_v43, %v850_v20  ;;  %v2283_v56 = vadd.f32 %v921_v22, %v855_v21 }
 0x2da   : > { %v974_v9 = vpop.f32.mrf.mxu1  ;;  %1726 = vpow2.f32 %v1011_v28  ;;  %v1013_v54 = vmul.f32 1.442695, %v2279_v51  ;;  %v923_v35 = vpop.f32.mrf.mxu0  ;;  %vm988_vm12 = vcmp.gt.f32.partialorder %v2279_v51, 0.0  ;;  %vm989_vm0 = vcmp.gt.f32.partialorder %v2273_v45, 0.0 }
 0x2db   : > { %v2285_v52 = vadd.f32 %v974_v9, %v855_v21  ;;  %1728 = vpow2.f32 %v1015_v49  ;;  %v1017_v32 = vmul.f32 1.442695, %v2281_v33  ;;  %v1019_v55 = vmul.f32 1.442695, %v2283_v56 }
 0x2dc   : > { %v976_v36 = vpop.f32.mrf.mxu1  ;;  %1730 = vpow2.f32 %v1013_v54  ;;  %v2291_v60 = vadd.f32 %v923_v35, %v855_v21  ;;  %vm990_vm14 = vcmp.gt.f32.partialorder %v2281_v33, 0.0  ;;  %vm991_vm15 = vcmp.gt.f32.partialorder %v2283_v56, 0.0 }
 0x2dd   : > { %v1023_v58 = vmul.f32 1.442695, %v2285_v52  ;;  %1732 = vpow2.f32 %v1017_v32  ;;  %v2293_v39 = vadd.f32 %v976_v36, %v855_v21  ;;  %vm993_vm1 = vcmp.gt.f32.partialorder %v2285_v52, 0.0 }
 0x2de   : > { %1734 = vpow2.f32 %v1019_v55  ;;  %v1711_v61 = vpop.eup %1710  ;;  %v1021_v0 = vmul.f32 1.442695, %v2291_v60  ;;  %vm992_vm2 = vcmp.gt.f32.partialorder %v2291_v60, 0.0 }
 0x2df   : > { %1736 = vpow2.f32 %v1023_v58  ;;  %v1025_v19 = vmul.f32 1.442695, %v2293_v39  ;;  %v1534_v57 = vadd.f32 -1.0, %v1711_v61  ;;  %vm994_vm3 = vcmp.gt.f32.partialorder %v2293_v39, 0.0 }
 0x2e0   : > { %v1713_v3 = vpop.eup %1712  ;;  %1738 = vpow2.f32 %v1021_v0 }
 0x2e1   : > { %v1715_v5 = vpop.eup %1714  ;;  %1740 = vpow2.f32 %v1025_v19  ;;  %v1043_v50 = vmul.f32 1.6732632, %v1534_v57  ;;  %v1536_v23 = vadd.f32 -1.0, %v1713_v3 }
 0x2e2   : > { %v1717_v7 = vpop.eup %1716  ;;  %v1535_v16 = vadd.f32 -1.0, %v1715_v5 }
 0x2e3   : > { %v1719_v10 = vpop.eup %1718  ;;  %v1537_v62 = vadd.f32 -1.0, %v1717_v7  ;;  %v1059_v17 = vsel %vm979_vm6, %v2249_v24, %v1043_v50  ;;  %v1045_v41 = vmul.f32 1.6732632, %v1536_v23  ;;  %vm2564_vm6 = vcmask 261120  }
 0x2e4   : > { %v1721_v13 = vpop.eup %1720  ;;  %v1044_v53 = vmul.f32 1.6732632, %v1535_v16  ;;  %v1538_v29 = vadd.f32 -1.0, %v1719_v10 }
 0x2e5   : > { %v1723_v1 = vpop.eup %1722  ;;  %v1046_v42 = vmul.f32 1.6732632, %v1537_v62  ;;  %v1540_v11 = vadd.f32 -1.0, %v1721_v13 }
 0x2e6   : > { %v1725_v14 = vpop.eup %1724  ;;  %v1539_v20 = vadd.f32 -1.0, %v1723_v1  ;;  %v1060_v28 = vsel %vm980_vm7, %v2255_v12, %v1044_v53  ;;  %v1047_v49 = vmul.f32 1.6732632, %v1538_v29  ;;  %vm2565_vm7 = vmmov %vm2564_vm6 }
 0x2e7   : > { %v1727_v18 = vpop.eup %1726  ;;  %v1541_v27 = vadd.f32 -1.0, %v1725_v14  ;;  %v1062_v3 = vsel %vm982_vm8, %v2257_v30, %v1046_v42  ;;  %v1049_v12 = vmul.f32 1.6732632, %v1540_v11  ;;  %v1076_v23 = vmul.f32 1.050701, %v1060_v28  ;;  %vm2566_vm8 = vmmov %vm2564_vm6  ;;  %v1117_v28 = vpop.permute.xlu1 %1116 }
 0x2e8   : > { %v1729_v21 = vpop.eup %1728  ;;  %v1048_v38 = vmul.f32 1.6732632, %v1539_v20  ;;  %v1542_v63 = vadd.f32 -1.0, %v1727_v18  ;;  %v1063_v5 = vsel %vm983_vm9, %v2259_v37, %v1047_v49  ;;  %vm2567_vm9 = vmmov %vm2564_vm6 }
 0x2e9   : > { %v1731_v26 = vpop.eup %1730  ;;  %v1544_v44 = vadd.f32 -1.0, %v1729_v21  ;;  %v1050_v15 = vmul.f32 1.6732632, %v1541_v27  ;;  %v1079_v27 = vmul.f32 1.050701, %v1063_v5 }
 0x2ea   : > { %v1733_v6 = vpop.eup %1732  ;;  %v1543_v2 = vadd.f32 -1.0, %v1731_v26  ;;  %v1064_v54 = vsel %vm984_vm10, %v2267_v47, %v1048_v38  ;;  %v1051_v35 = vmul.f32 1.6732632, %v1542_v63  ;;  %v1078_v26 = vmul.f32 1.050701, %v1062_v3 }
 0x2eb   : > { %v1735_v34 = vpop.eup %1734  ;;  %v1545_v46 = vadd.f32 -1.0, %v1733_v6  ;;  %v1053_v55 = vmul.f32 1.6732632, %v1544_v44  ;;  %v1066_v19 = vsel %vm986_vm11, %v2269_v8, %v1050_v15  ;;  %v1080_v13 = vmul.f32 1.050701, %v1064_v54 }
 0x2ec   : > { %v1737_v59 = vpop.eup %1736  ;;  %v1546_v43 = vadd.f32 -1.0, %v1735_v34  ;;  %v1052_v24 = vmul.f32 1.6732632, %v1543_v2  ;;  %v1067_v8 = vsel %vm987_vm13, %v2271_v31, %v1051_v35  ;;  %v1082_v37 = vmul.f32 1.050701, %v1066_v19 }
 0x2ed   : > { %v1739_v48 = vpop.eup %1738  ;;  %v1548_v22 = vadd.f32 -1.0, %v1737_v59  ;;  %v1054_v36 = vmul.f32 1.6732632, %v1545_v46  ;;  %v1083_v20 = vmul.f32 1.050701, %v1067_v8  ;;  %v1097_v2 = vpack.c.bf16 %v1080_v13, %v1076_v23  ;;  %v1644_v59 = vld [vmem:[%s2554_s3 + $0x20] sm:$0xff]  }
 0x2ee   : > { %v1741_v9 = vpop.eup %1740  ;;  %v1055_v32 = vmul.f32 1.6732632, %v1546_v43  ;;  %v1547_v61 = vadd.f32 -1.0, %v1739_v48  ;;  %v1068_v7 = vsel %vm988_vm12, %v2279_v51, %v1052_v24  ;;  %v1069_v51 = vsel %vm989_vm0, %v2273_v45, %v1053_v55 }
 0x2ef   : > { %v1057_v58 = vmul.f32 1.6732632, %v1548_v22  ;;  %v1549_v0 = vadd.f32 -1.0, %v1741_v9  ;;  %v1084_v14 = vmul.f32 1.050701, %v1068_v7  ;;  %v1061_v45 = vsel %vm981_vm5, %v2251_v25, %v1045_v41  ;;  %v1112_v41 = vpop.permute.xlu0 %1111 }
 0x2f0   : > { %v1071_v47 = vsel %vm991_vm15, %v2283_v56, %v1055_v32  ;;  %v1056_v10 = vmul.f32 1.6732632, %v1547_v61  ;;  %v1070_v56 = vsel %vm990_vm14, %v2281_v33, %v1054_v36  ;;  %v1065_v33 = vsel %vm985_vm4, %v2261_v40, %v1049_v12 }
 0x2f1   : > { %v1073_v30 = vsel %vm993_vm1, %v2285_v52, %v1057_v58  ;;  %v1058_v57 = vmul.f32 1.6732632, %v1549_v0  ;;  %v1087_v1 = vmul.f32 1.050701, %v1071_v47  ;;  %v1086_v21 = vmul.f32 1.050701, %v1070_v56 }
 0x2f2   : > { %v1072_v52 = vsel %vm992_vm2, %v2291_v60, %v1056_v10  ;;  %v1089_v16 = vmul.f32 1.050701, %v1073_v30  ;;  %v1085_v60 = vmul.f32 1.050701, %v1069_v51  ;;  %v1081_v29 = vmul.f32 1.050701, %v1065_v33  ;;  %v1127_v51 = vpop.permute.xlu1 %1126 }
 0x2f3   : > { %v1088_v18 = vmul.f32 1.050701, %v1072_v52  ;;  %v1074_v31 = vsel %vm994_vm3, %v2293_v39, %v1058_v57  ;;  %v1100_v6 = vpack.c.bf16 %v1087_v1, %v1083_v20  ;;  %v1075_v34 = vmul.f32 1.050701, %v1059_v17  ;;  %v1645_v17 = vld [vmem:[%s2554_s3 + $0x28] sm:$0xff]   ;;  %v1122_v3 = vpop.permute.xlu0 %1121 }
 0x2f4   : > { %v1090_v50 = vmul.f32 1.050701, %v1074_v31  ;;  %v1102_v39 = vpack.c.bf16 %v1089_v16, %v1085_v60  ;;  %v1099_v40 = vpack.c.bf16 %v1082_v37, %v1078_v26  ;;  %v1077_v38 = vmul.f32 1.050701, %v1061_v45 }
 0x2f5   : > { %v1101_v62 = vpack.c.bf16 %v1088_v18, %v1084_v14  ;;  %v1096_v63 = vpack.c.bf16 %v1079_v27, %v1075_v34 }
 0x2f6   : > { %v1103_v53 = vpack.c.bf16 %v1090_v50, %v1086_v21  ;;  %v1098_v25 = vpack.c.bf16 %v1081_v29, %v1077_v38 }
 0x2f7   : > { %1157 = vmatprep.subr.bf16.mxu0 %v1101_v62 }
 0x2f8   : > { %1210 = vmatprep.subr.bf16.mxu1 %v1103_v53  ;;  %1158 = vmatpush1.bf16.msra.mxu0 %v1100_v6 }
 0x2f9   : > { %1211 = vmatpush1.bf16.msra.mxu1 %v1102_v39  ;;  %1159 = vmatprep.subr.bf16.mxu0 %v1097_v2 }
 0x2fa   : > { %1212 = vmatprep.subr.bf16.mxu1 %v1099_v40 }
 0x2fc   : > { %1160 = vmatpush1.bf16.msra.mxu0 %v1096_v63 }
 0x2fd   : > { %1213 = vmatpush1.bf16.msra.mxu1 %v1098_v25 }
 0x2ff   : > { %1560 = vmatmul.mubr.msk.bf16.vlgmr.msra.gmra.mxu0 %vm2564_vm6, %v1644_v59 }
 0x300   : > { %1562 = vmatmul.mubr.msk.bf16.vlgmr.msra.gmra.mxu1 %vm2565_vm7, %v1644_v59  ;;  %1187 = vmatprep.mubr.bf16.mxu0 %v1836_v4 }
 0x301   : > { %1240 = vmatprep.mubr.bf16.mxu1 %v1836_v4 }
 0x307   : > { %1561 = vmatmul.mubr.msk.bf16.gmra.mxu0 %vm2566_vm8, %v1645_v17 }
 0x308   : > { %1563 = vmatmul.mubr.msk.bf16.gmra.mxu1 %vm2567_vm9, %v1645_v17 }
 0x3bf   : > { %v1179_v42 = vpop.f32.mrf.mxu0 }
 0x3c0   : > { %v2373_v44 = vadd.f32 %v1179_v42, %v1112_v41  ;;  %v1232_v11 = vpop.f32.mrf.mxu1 }
 0x3c1   : > { %v2375_v15 = vadd.f32 %v1232_v11, %v1112_v41  ;;  %v1181_v46 = vpop.f32.mrf.mxu0 }
 0x3c2   : > { %v1267_v43 = vmul.f32 1.442695, %v2373_v44  ;;  %v2378_v48 = vadd.f32 %v1181_v46, %v1112_v41  ;;  %v1234_v4 = vpop.f32.mrf.mxu1  ;;  %vm1251_vm10 = vcmp.gt.f32.partialorder %v2373_v44, 0.0 }
 0x3c3   : > { %v1271_v49 = vmul.f32 1.442695, %v2375_v15  ;;  %v2381_v24 = vadd.f32 %v1234_v4, %v1112_v41  ;;  %v1183_v22 = vpop.f32.mrf.mxu0  ;;  %vm1253_vm11 = vcmp.gt.f32.partialorder %v2375_v15, 0.0 }
 0x3c4   : > { %1742 = vpow2.f32 %v1267_v43  ;;  %v1269_v9 = vmul.f32 1.442695, %v2378_v48  ;;  %v2384_v54 = vadd.f32 %v1183_v22, %v1117_v28  ;;  %v1236_v35 = vpop.f32.mrf.mxu1  ;;  %vm1252_vm12 = vcmp.gt.f32.partialorder %v2378_v48, 0.0 }
 0x3c5   : > { %1744 = vpow2.f32 %v1271_v49  ;;  %v1273_v36 = vmul.f32 1.442695, %v2381_v24  ;;  %v2387_v32 = vadd.f32 %v1236_v35, %v1117_v28  ;;  %v1185_v55 = vpop.f32.mrf.mxu0  ;;  %vm1254_vm13 = vcmp.gt.f32.partialorder %v2381_v24, 0.0 }
 0x3c6   : > { %1746 = vpow2.f32 %v1269_v9  ;;  %v1275_v58 = vmul.f32 1.442695, %v2384_v54  ;;  %v2390_v61 = vadd.f32 %v1185_v55, %v1117_v28  ;;  %v1238_v0 = vpop.f32.mrf.mxu1  ;;  %vm1255_vm14 = vcmp.gt.f32.partialorder %v2384_v54, 0.0 }
 0x3c7   : > { %1748 = vpow2.f32 %v1273_v36  ;;  %v1279_v12 = vmul.f32 1.442695, %v2387_v32  ;;  %v2393_v19 = vadd.f32 %v1238_v0, %v1117_v28  ;;  %v1189_v47 = vpop.f32.mrf.mxu0  ;;  %vm1257_vm15 = vcmp.gt.f32.partialorder %v2387_v32, 0.0 }
 0x3c8   : > { %1750 = vpow2.f32 %v1275_v58  ;;  %v1277_v5 = vmul.f32 1.442695, %v2390_v61  ;;  %v2396_v7 = vadd.f32 %v1189_v47, %v1122_v3  ;;  %v1242_v30 = vpop.f32.mrf.mxu1  ;;  %vm1256_vm0 = vcmp.gt.f32.partialorder %v2390_v61, 0.0 }
 0x3c9   : > { %1752 = vpow2.f32 %v1279_v12  ;;  %v1281_v10 = vmul.f32 1.442695, %v2393_v19  ;;  %v2399_v13 = vadd.f32 %v1242_v30, %v1122_v3  ;;  %v1191_v8 = vpop.f32.mrf.mxu0  ;;  %vm1258_vm1 = vcmp.gt.f32.partialorder %v2393_v19, 0.0 }
 0x3ca   : > { %1754 = vpow2.f32 %v1277_v5  ;;  %v1283_v56 = vmul.f32 1.442695, %v2396_v7  ;;  %v2402_v57 = vadd.f32 %v1191_v8, %v1122_v3  ;;  %v1244_v37 = vpop.f32.mrf.mxu1  ;;  %vm1259_vm2 = vcmp.gt.f32.partialorder %v2396_v7, 0.0 }
 0x3cb   : > { %1756 = vpow2.f32 %v1281_v10  ;;  %v1287_v1 = vmul.f32 1.442695, %v2399_v13  ;;  %v2405_v52 = vadd.f32 %v1244_v37, %v1122_v3  ;;  %v1193_v14 = vpop.f32.mrf.mxu0  ;;  %vm1261_vm3 = vcmp.gt.f32.partialorder %v2399_v13, 0.0 }
 0x3cc   : > { %1758 = vpow2.f32 %v1283_v56  ;;  %v1285_v16 = vmul.f32 1.442695, %v2402_v57  ;;  %v2408_v18 = vadd.f32 %v1193_v14, %v1127_v51  ;;  %v1246_v31 = vpop.f32.mrf.mxu1  ;;  %vm1260_vm4 = vcmp.gt.f32.partialorder %v2402_v57, 0.0 }
 0x3cd   : > { %1760 = vpow2.f32 %v1287_v1  ;;  %v1289_v33 = vmul.f32 1.442695, %v2405_v52  ;;  %v2411_v20 = vadd.f32 %v1246_v31, %v1127_v51  ;;  %v1195_v21 = vpop.f32.mrf.mxu0  ;;  %vm1262_vm5 = vcmp.gt.f32.partialorder %v2405_v52, 0.0 }
 0x3ce   : > { %1762 = vpow2.f32 %v1285_v16  ;;  %v1291_v50 = vmul.f32 1.442695, %v2408_v18  ;;  %v2414_v45 = vadd.f32 %v1195_v21, %v1127_v51  ;;  %v1248_v23 = vpop.f32.mrf.mxu1  ;;  %vm1263_vm6 = vcmp.gt.f32.partialorder %v2408_v18, 0.0 }
 0x3cf   : > { %1764 = vpow2.f32 %v1289_v33  ;;  %v1295_v60 = vmul.f32 1.442695, %v2411_v20  ;;  %v2417_v62 = vadd.f32 %v1248_v23, %v1127_v51  ;;  %vm1265_vm7 = vcmp.gt.f32.partialorder %v2411_v20, 0.0 }
 0x3d0   : > { %1766 = vpow2.f32 %v1291_v50  ;;  %v1293_v26 = vmul.f32 1.442695, %v2414_v45  ;;  %vm1264_vm8 = vcmp.gt.f32.partialorder %v2414_v45, 0.0 }
 0x3d1   : > { %v1743_v27 = vpop.eup %1742  ;;  %1768 = vpow2.f32 %v1295_v60  ;;  %v1297_v6 = vmul.f32 1.442695, %v2417_v62  ;;  %vm1266_vm9 = vcmp.gt.f32.partialorder %v2417_v62, 0.0 }
 0x3d2   : > { %v1745_v53 = vpop.eup %1744  ;;  %v1564_v29 = vadd.f32 -1.0, %v1743_v27  ;;  %1770 = vpow2.f32 %v1293_v26 }
 0x3d3   : > { %v1747_v39 = vpop.eup %1746  ;;  %v1566_v2 = vadd.f32 -1.0, %v1745_v53  ;;  %1772 = vpow2.f32 %v1297_v6 }
 0x3d4   : > { %v1749_v34 = vpop.eup %1748  ;;  %v1315_v40 = vmul.f32 1.6732632, %v1564_v29  ;;  %v1565_v38 = vadd.f32 -1.0, %v1747_v39 }
 0x3d5   : > { %v1751_v63 = vpop.eup %1750  ;;  %v1317_v25 = vmul.f32 1.6732632, %v1566_v2  ;;  %v1567_v59 = vadd.f32 -1.0, %v1749_v34 }
 0x3d6   : > { %v1753_v17 = vpop.eup %1752  ;;  %v1331_v41 = vsel %vm1251_vm10, %v2373_v44, %v1315_v40  ;;  %v1316_v42 = vmul.f32 1.6732632, %v1565_v38  ;;  %v1568_v11 = vadd.f32 -1.0, %v1751_v63 }
 0x3d7   : > { %v1755_v46 = vpop.eup %1754  ;;  %v1347_v43 = vmul.f32 1.050701, %v1331_v41  ;;  %v1333_v4 = vsel %vm1253_vm11, %v2375_v15, %v1317_v25  ;;  %v1318_v28 = vmul.f32 1.6732632, %v1567_v59  ;;  %v1570_v49 = vadd.f32 -1.0, %v1753_v17 }
 0x3d8   : > { %v1757_v22 = vpop.eup %1756  ;;  %v1349_v9 = vmul.f32 1.050701, %v1333_v4  ;;  %v1332_v44 = vsel %vm1252_vm12, %v2378_v48, %v1316_v42  ;;  %v1319_v35 = vmul.f32 1.6732632, %v1568_v11  ;;  %v1569_v36 = vadd.f32 -1.0, %v1755_v46 }
 0x3d9   : > { %v1759_v55 = vpop.eup %1758  ;;  %1363 = vst [vmem:[%s2445_s25] sm:$0xff] %v1347_v43  ;;  %v1348_v15 = vmul.f32 1.050701, %v1332_v44  ;;  %v1334_v58 = vsel %vm1254_vm13, %v2381_v24, %v1318_v28  ;;  %v1321_v0 = vmul.f32 1.6732632, %v1570_v49  ;;  %v1571_v48 = vadd.f32 -1.0, %v1757_v22 }
 0x3da   : > { %v1761_v3 = vpop.eup %1760  ;;  %1365 = vst [vmem:[%s2445_s25 + $0x10] sm:$0xff] %v1349_v9  ;;  %v1350_v12 = vmul.f32 1.050701, %v1334_v58  ;;  %v1335_v47 = vsel %vm1255_vm14, %v2384_v54, %v1319_v35  ;;  %v1320_v5 = vmul.f32 1.6732632, %v1569_v36  ;;  %v1572_v30 = vadd.f32 -1.0, %v1759_v55 }
 0x3db   : > { %v1763_v10 = vpop.eup %1762  ;;  %1364 = vst [vmem:[%s2445_s25 + $0x8] sm:$0xff] %v1348_v15  ;;  %v1351_v8 = vmul.f32 1.050701, %v1335_v47  ;;  %v1337_v24 = vsel %vm1257_vm15, %v2387_v32, %v1321_v0  ;;  %v1322_v56 = vmul.f32 1.6732632, %v1571_v48  ;;  %v1574_v37 = vadd.f32 -1.0, %v1761_v3 }
 0x3dc   : > { %v1765_v51 = vpop.eup %1764  ;;  %1366 = vst [vmem:[%s2445_s25 + $0x18] sm:$0xff] %v1350_v12  ;;  %v1353_v1 = vmul.f32 1.050701, %v1337_v24  ;;  %v1336_v54 = vsel %vm1256_vm0, %v2390_v61, %v1320_v5  ;;  %v1323_v14 = vmul.f32 1.6732632, %v1572_v30  ;;  %v1573_v16 = vadd.f32 -1.0, %v1763_v10 }
 0x3dd   : > { %v1767_v31 = vpop.eup %1766  ;;  %1367 = vst [vmem:[%s2445_s25 + $0x20] sm:$0xff] %v1351_v8  ;;  %v1352_v33 = vmul.f32 1.050701, %v1336_v54  ;;  %v1338_v32 = vsel %vm1258_vm1, %v2393_v19, %v1322_v56  ;;  %v1325_v21 = vmul.f32 1.6732632, %v1574_v37  ;;  %v1575_v50 = vadd.f32 -1.0, %v1765_v51 }
 0x3de   : > { %v1769_v23 = vpop.eup %1768  ;;  %1369 = vst [vmem:[%s2445_s25 + $0x30] sm:$0xff] %v1353_v1  ;;  %v1354_v60 = vmul.f32 1.050701, %v1338_v32  ;;  %v1339_v61 = vsel %vm1259_vm2, %v2396_v7, %v1323_v14  ;;  %v1324_v26 = vmul.f32 1.6732632, %v1573_v16  ;;  %v1576_v27 = vadd.f32 -1.0, %v1767_v31 }
 0x3df   : > { %v1771_v6 = vpop.eup %1770  ;;  %1368 = vst [vmem:[%s2445_s25 + $0x28] sm:$0xff] %v1352_v33  ;;  %v1355_v53 = vmul.f32 1.050701, %v1339_v61  ;;  %v1341_v19 = vsel %vm1261_vm3, %v2399_v13, %v1325_v21  ;;  %v1326_v29 = vmul.f32 1.6732632, %v1575_v50  ;;  %v1578_v39 = vadd.f32 -1.0, %v1769_v23 }
 0x3e0   : > { %v1773_v2 = vpop.eup %1772  ;;  %1370 = vst [vmem:[%s2445_s25 + $0x38] sm:$0xff] %v1354_v60  ;;  %v1357_v34 = vmul.f32 1.050701, %v1341_v19  ;;  %v1340_v7 = vsel %vm1260_vm4, %v2402_v57, %v1324_v26  ;;  %v1327_v40 = vmul.f32 1.6732632, %v1576_v27  ;;  %v1577_v38 = vadd.f32 -1.0, %v1771_v6 }
 0x3e1   : > { %1371 = vst [vmem:[%s2445_s25 + $0x40] sm:$0xff] %v1355_v53  ;;  %v1356_v63 = vmul.f32 1.050701, %v1340_v7  ;;  %v1342_v13 = vsel %vm1262_vm5, %v2405_v52, %v1326_v29  ;;  %v1329_v25 = vmul.f32 1.6732632, %v1578_v39  ;;  %v1579_v59 = vadd.f32 -1.0, %v1773_v2 }
 0x3e2   : > { %1373 = vst [vmem:[%s2445_s25 + $0x50] sm:$0xff] %v1357_v34  ;;  %v1358_v17 = vmul.f32 1.050701, %v1342_v13  ;;  %v1343_v57 = vsel %vm1263_vm6, %v2408_v18, %v1327_v40  ;;  %v1328_v41 = vmul.f32 1.6732632, %v1577_v38 }
 0x3e3   : > { %1372 = vst [vmem:[%s2445_s25 + $0x48] sm:$0xff] %v1356_v63  ;;  %v1359_v42 = vmul.f32 1.050701, %v1343_v57  ;;  %v1345_v52 = vsel %vm1265_vm7, %v2411_v20, %v1329_v25  ;;  %v1330_v11 = vmul.f32 1.6732632, %v1579_v59 }
 0x3e4   : > { %1374 = vst [vmem:[%s2445_s25 + $0x58] sm:$0xff] %v1358_v17  ;;  %v1361_v46 = vmul.f32 1.050701, %v1345_v52  ;;  %v1344_v18 = vsel %vm1264_vm8, %v2414_v45, %v1328_v41 }
 0x3e5   : > { %1375 = vst [vmem:[%s2445_s25 + $0x60] sm:$0xff] %v1359_v42  ;;  %v1360_v43 = vmul.f32 1.050701, %v1344_v18  ;;  %v1346_v20 = vsel %vm1266_vm9, %v2417_v62, %v1330_v11 }
 0x3e6   : > { %1377 = vst [vmem:[%s2445_s25 + $0x70] sm:$0xff] %v1361_v46  ;;  %v1362_v4 = vmul.f32 1.050701, %v1346_v20 }
 0x3e7   : > { %1376 = vst [vmem:[%s2445_s25 + $0x68] sm:$0xff] %v1360_v43 }
 0x3e8   : > { %1378 = vst [vmem:[%s2445_s25 + $0x78] sm:$0xff] %v1362_v4 }
 0x3e9   : > { %1787 = shalt.err (!%p1784_p5)
}
 0x3ea   : > { %s1788_s14 = scalar_lea.hbm %s2501_s7, 2048  ;;  %s1792_s17 = scalar_lea.hbm %s2556_s5, 4096 }
 0x3eb   : > { %p1789_p7 = scmp.ne.s32.totalorder %s2501_s7, %s1788_s14  ;;  %p1793_p12 = scmp.lt.s32.totalorder %s2501_s7, %s2556_s5 }
 0x3ec   : > { %p1794_p13 = scmp.lt.s32.totalorder %s1792_s17, %s1788_s14 }
 0x3ed   : > { %p1790_p10 = pnand %p1789_p7, %p1909_p6 }
 0x3ee   : > { %p1795_p0 = por %p1794_p13, %p1793_p12 }
 0x3ef   : > { %p1791_p11 = pneg %p1790_p10 }
 0x3f1   : > { %p1796_p1 = pnand %p1795_p0, %p1791_p11 }
 0x3f3   : > { %1799 = shalt.err (!%p1796_p1)
}
 0x3f4   : > { %s1838_s26 = smov 512   ;;  %s1839_s22 = smov 1024  }
 0x3f5   : > { %s1840_s6 = smov 32  }
 0x3f6   : > { %1587 = dma.vmem_to_hbm [thread:$0]  (%p1909_p6), %s2505_s30, 2048, %s2501_s7, %s1380_s8, %s1838_s26, %s1839_s22, %s1840_s6  }
 0x3f7 PF: > { %s1408_s9 = sand.u32 1, %s1822_s18   ;;  %p1590_p2 = pnand %p1463_p9, %p1913_p8 }
 0x3f8   : > { %s1409_s10 = scalar_lea.sflag [#allocation4], %s1408_s9 }
 0x3f9   : > { %p1591_p3 = pneg %p1590_p2 }
 0x3fb   : > { %1817 = dma.done.wait (%p1591_p3), %s1409_s10, 2048  }
 0x3fc   : > { %1819 = vsyncadd (%p1591_p3), %s1409_s10, 4294965248  ;;  %p15_p4 = scmp.ge.s32.totalorder %s1894_s24, 4   ;;  %s2568_s18 = smov %s1826_s19 }
 0x3fd   : > { %s2569_s19 = smov %s1830_s20  ;;  %s2570_s20 = smov %s1907_s27 }
 0x3fe   : > { %s2571_s21 = smov %s1894_s24  ;;  %17 = sbr.rel (!%p15_p4) target bundleno = 3 (0x3), region = 107 }
 0x403   :  { %1414 = vsyncpa [#allocation4], 1 }
 0x404   :  { %1416 = vsyncpa [#allocation4 + $0x1], 1 }

</bundles_post_ra>
